<compile_context>
chip_gen: v7x
topology: tpu7x:2x2x1
jax: 0.10.0
libtpu: 0.0.40
codegen_flags: <defaults>
</compile_context>

<pallas_src>
import jax
import jax.numpy as jnp
from jax.experimental import pallas as pl
from jax.experimental.pallas import tpu as pltpu


def mlp_kernel(xT_ref, w1_ref, b1_ref, w2_ref, b2_ref, o_ref):
    """One batch tile, batch on the lane axis.

    xT_ref : (F, TB)  bf16  -- input features, batch lane-dense
    w1_ref : (H, F)   bf16  -- fc1 weight (PyTorch (out, in) layout)
    b1_ref : (H, 1)   f32   -- fc1 bias (sublane column, broadcast over lanes)
    w2_ref : (H, 1)   f32   -- fc2 weight as a column
    b2_ref : (1, 1)   f32   -- fc2 bias, scalar in SMEM
    o_ref  : (1, TB)  f32   -- lane-dense sigmoid output row
    """
    # fc1 on the MXU: (H, F) @ (F, TB) -> (H, TB), f32 accumulation.
    h = jnp.dot(w1_ref[...], xT_ref[...], preferred_element_type=jnp.float32)
    h = jnp.maximum(h + b1_ref[...], 0.0)                    # bias + ReLU (VPU)
    # fc2 has output width 1 -> VPU multiply + sublane (XLU) reduction instead
    # of occupying the MXU with a 1-row matmul.
    out = jnp.sum(h * w2_ref[...], axis=0, keepdims=True)    # (1, TB)
    o_ref[...] = jax.nn.sigmoid(out + b2_ref[0, 0])          # EUP sigmoid


def _round_up(v, m):
    return ((v + m - 1) // m) * m


@jax.jit
def net_forward(x, w1, b1, w2, b2):
    """x: (B, input_size) f32; params in PyTorch layout. Returns (B, 1) f32."""
    B, F = x.shape
    H = w1.shape[0]

    # --- Batch tile selection (review item 1 & 4) -------------------------
    # Lane-dense tiles up to 32768 wide (x tile 1 MiB bf16, double-buffered
    # ~2.3 MiB VMEM incl. output -> fits v5e/v6e/v7x with huge headroom).
    # For mid-size batches split into exactly 2 steps so both v7x TCs stream
    # half the batch; for huge batches cap at 32768 (grid >= 3 steps).
    TB_CAP = 32768
    B128 = _round_up(B, 128)                 # lane alignment
    if B128 <= 1024:
        TB = B128                            # tiny batch: one step
    elif B128 <= 2 * TB_CAP:
        TB = _round_up(B128 // 2, 128)       # exactly 2 steps -> v7x megacore
    else:
        TB = TB_CAP                          # big batch: 1 MiB x-tile / step
    n_steps = pl.cdiv(B128, TB)
    B_pad = n_steps * TB

    # --- Wrapper-side layout plumbing (fused into ONE pass under jit) ------
    # pad -> transpose -> bf16 cast of x compiles to a single XLA fusion:
    # one read of x (f32) + one write of xT (bf16). (Review item 2, option c.)
    x_pad = jnp.pad(x, ((0, B_pad - B), (0, 0)))
    xT = x_pad.T.astype(jnp.bfloat16)                 # (F, B_pad)
    w1_b = w1.astype(jnp.bfloat16)                    # (H, F)
    b1_c = b1.astype(jnp.float32).reshape(H, 1)       # (H, 1)
    w2_c = w2.astype(jnp.float32).reshape(H, 1)       # (H, 1)
    b2_s = b2.astype(jnp.float32).reshape(1, 1)       # (1, 1) -> SMEM scalar

    # Advisory cost estimate so XLA schedules the fused relayout around the
    # custom call instead of serializing it.
    cost = pl.CostEstimate(
        flops=2 * B_pad * F * H + 2 * B_pad * H,
        transcendentals=B_pad,                                   # sigmoid
        bytes_accessed=B_pad * F * 2 + B_pad * 4                 # xT + out
        + H * F * 2 + H * 4 + H * 4 + 4,                         # weights
    )

    out = pl.pallas_call(
        mlp_kernel,
        out_shape=jax.ShapeDtypeStruct((1, B_pad), jnp.float32),
        grid=(n_steps,),
        in_specs=[
            # x tile, double-buffered/pipelined by BlockSpec.
            # (sweep knob: pipeline_mode=pl.Buffered(3) once TB >= 8192)
            pl.BlockSpec((F, TB), lambda i: (0, i)),
            # weights/biases: constant index maps -> VMEM-resident, DMA'd once
            pl.BlockSpec((H, F), lambda i: (0, 0)),
            pl.BlockSpec((H, 1), lambda i: (0, 0)),
            pl.BlockSpec((H, 1), lambda i: (0, 0)),
            pl.BlockSpec(memory_space=pltpu.MemorySpace.SMEM),   # b2 scalar
        ],
        out_specs=pl.BlockSpec((1, TB), lambda i: (0, i)),       # lane-dense
        compiler_params=pltpu.CompilerParams(
            dimension_semantics=("parallel",),                   # megacore v7x
        ),
        cost_estimate=cost,
    )(xT, w1_b, b1_c, w2_c, b2_s)

    # (1, B_pad) lane-dense slab -> (B, 1) column, drop batch padding
    # (fused with the surrounding jit; padded lanes are sigmoid(bias) of
    # zero-padded inputs, i.e. finite and simply discarded here).
    return out[0, :B].reshape(B, 1)


if __name__ == "__main__":
    # Small shapes consistent with the module: input_size=16, hidden_size=30.
    batch = 8
    input_size = 16
    hidden_size = 30

    key = jax.random.PRNGKey(0)
    kx, kw1, kb1, kw2, kb2 = jax.random.split(key, 5)

    x = jax.random.normal(kx, (batch, input_size), dtype=jnp.float32)
    # PyTorch-style param init: weight (out, in), bias (out,).
    bound1 = 1.0 / jnp.sqrt(input_size)
    w1 = jax.random.uniform(kw1, (hidden_size, input_size), jnp.float32, -bound1, bound1)
    b1 = jax.random.uniform(kb1, (hidden_size,), jnp.float32, -bound1, bound1)
    bound2 = 1.0 / jnp.sqrt(hidden_size)
    w2 = jax.random.uniform(kw2, (1, hidden_size), jnp.float32, -bound2, bound2)
    b2 = jax.random.uniform(kb2, (1,), jnp.float32, -bound2, bound2)

    out = net_forward(x, w1, b1, w2, b2)
    out = jax.block_until_ready(out)

    # Reference check in plain JAX f32 (same math as the torch forward).
    # Tolerance loosened because fc1 consumes bf16 activations/weights
    # (f32 accumulation) — a deliberate bandwidth optimization.
    ref = jax.nn.sigmoid(jnp.maximum(x @ w1.T + b1, 0.0) @ w2.T + b2)
    assert out.shape == (batch, 1)
    assert jnp.allclose(out, ref, atol=2e-2, rtol=2e-2), (
        float(jnp.max(jnp.abs(out - ref)))
    )

    print("KERNEL_OK")
</pallas_src>

<mosaic_0001>
module attributes {stable_mosaic.version = 11 : i64} {
  func.func @mlp_kernel(%arg0: i32, %arg1: memref<16x128xbf16, #tpu.memory_space<vmem>>, %arg2: memref<30x16xbf16, #tpu.memory_space<vmem>>, %arg3: memref<30x1xf32, #tpu.memory_space<vmem>>, %arg4: memref<30x1xf32, #tpu.memory_space<vmem>>, %arg5: memref<1x1xf32, #tpu.memory_space<smem>>, %arg6: memref<1x128xf32, #tpu.memory_space<vmem>>) attributes {dimension_semantics = [#tpu.dimension_semantics<parallel>], iteration_bounds = array<i64: 1>, scalar_prefetch = 0 : i64, scratch_operands = 0 : i64, tpu.core_type = #tpu.core_type<tc>, window_params = [{transform_indices = @transform_0, window_bounds = array<i64: 16, 128>}, {pipeline_mode = #tpu.pipeline_mode<synchronous>, transform_indices = @transform_1, window_bounds = array<i64: 30, 16>}, {pipeline_mode = #tpu.pipeline_mode<synchronous>, transform_indices = @transform_2, window_bounds = array<i64: 30, 1>}, {pipeline_mode = #tpu.pipeline_mode<synchronous>, transform_indices = @transform_3, window_bounds = array<i64: 30, 1>}, {transform_indices = @transform_4, window_bounds = array<i64: 1, 1>}, {transform_indices = @transform_5, window_bounds = array<i64: 1, 128>}]} {
    %c0 = arith.constant 0 : index
    %c0_0 = arith.constant 0 : index
    %0 = vector.load %arg2[%c0, %c0_0] : memref<30x16xbf16, #tpu.memory_space<vmem>>, vector<30x16xbf16>
    %c0_1 = arith.constant 0 : index
    %c0_2 = arith.constant 0 : index
    %1 = vector.load %arg1[%c0_1, %c0_2] : memref<16x128xbf16, #tpu.memory_space<vmem>>, vector<16x128xbf16>
    %cst = arith.constant dense<0.000000e+00> : vector<30x128xf32>
    %2 = tpu.matmul %0, %1, %cst {dimension_numbers = #tpu.dot_dimension_numbers<[1], [0], [0], [1], [0, 0, 1, 1], [], []>} : vector<30x16xbf16>, vector<16x128xbf16>, vector<30x128xf32> -> vector<30x128xf32>
    %c0_3 = arith.constant 0 : index
    %c0_4 = arith.constant 0 : index
    %3 = vector.load %arg3[%c0_3, %c0_4] : memref<30x1xf32, #tpu.memory_space<vmem>>, vector<30x1xf32>
    %4 = vector.broadcast %3 : vector<30x1xf32> to vector<30x128xf32>
    %5 = arith.addf %2, %4 : vector<30x128xf32>
    %cst_5 = arith.constant 0.000000e+00 : f32
    %6 = vector.broadcast %cst_5 : f32 to vector<30x128xf32>
    %7 = arith.maximumf %5, %6 : vector<30x128xf32>
    %c0_6 = arith.constant 0 : index
    %c0_7 = arith.constant 0 : index
    %8 = vector.load %arg4[%c0_6, %c0_7] : memref<30x1xf32, #tpu.memory_space<vmem>>, vector<30x1xf32>
    %9 = vector.broadcast %8 : vector<30x1xf32> to vector<30x128xf32>
    %10 = arith.mulf %7, %9 : vector<30x128xf32>
    %cst_8 = arith.constant dense<0.000000e+00> : vector<128xf32>
    %11 = vector.multi_reduction <add>, %10, %cst_8 [0] : vector<30x128xf32> to vector<128xf32>
    %12 = vector.shape_cast %11 : vector<128xf32> to vector<1x128xf32>
    %c0_9 = arith.constant 0 : index
    %c0_10 = arith.constant 0 : index
    %13 = memref.load %arg5[%c0_9, %c0_10] : memref<1x1xf32, #tpu.memory_space<smem>>
    %14 = vector.broadcast %13 : f32 to vector<1x128xf32>
    %15 = arith.addf %12, %14 : vector<1x128xf32>
    %16 = arith.negf %15 : vector<1x128xf32>
    %17 = math.exp %16 : vector<1x128xf32>
    %cst_11 = arith.constant 1.000000e+00 : f32
    %18 = vector.broadcast %cst_11 : f32 to vector<1x128xf32>
    %19 = arith.addf %18, %17 : vector<1x128xf32>
    %20 = arith.divf %18, %19 : vector<1x128xf32>
    %c0_12 = arith.constant 0 : index
    %c0_13 = arith.constant 0 : index
    %21 = vector.load %arg6[%c0_12, %c0_13] : memref<1x128xf32, #tpu.memory_space<vmem>>, vector<1x128xf32>
    tpu.vector_store %arg6[%c0_12, %c0_13], %20 {strides = array<i32>} : memref<1x128xf32, #tpu.memory_space<vmem>>, vector<1x128xf32>,
    return
  }
  func.func @transform_0(%arg0: i32) -> (i32, i32) {
    %c0_i32 = arith.constant 0 : i32
    %c0_i32_0 = arith.constant 0 : i32
    return %c0_i32, %arg0 : i32, i32
  }
  func.func @transform_1(%arg0: i32) -> (i32, i32) {
    %c0_i32 = arith.constant 0 : i32
    %c0_i32_0 = arith.constant 0 : i32
    %c0_i32_1 = arith.constant 0 : i32
    return %c0_i32, %c0_i32_0 : i32, i32
  }
  func.func @transform_2(%arg0: i32) -> (i32, i32) {
    %c0_i32 = arith.constant 0 : i32
    %c0_i32_0 = arith.constant 0 : i32
    %c0_i32_1 = arith.constant 0 : i32
    return %c0_i32, %c0_i32_0 : i32, i32
  }
  func.func @transform_3(%arg0: i32) -> (i32, i32) {
    %c0_i32 = arith.constant 0 : i32
    %c0_i32_0 = arith.constant 0 : i32
    %c0_i32_1 = arith.constant 0 : i32
    return %c0_i32, %c0_i32_0 : i32, i32
  }
  func.func @transform_4(%arg0: i32) -> (i32, i32) {
    %c0_i32 = arith.constant 0 : i32
    %c0_i32_0 = arith.constant 0 : i32
    %c0_i32_1 = arith.constant 0 : i32
    return %c0_i32, %c0_i32_0 : i32, i32
  }
  func.func @transform_5(%arg0: i32) -> (i32, i32) {
    %c0_i32 = arith.constant 0 : i32
    %c0_i32_0 = arith.constant 0 : i32
    return %c0_i32, %arg0 : i32, i32
  }
}

</mosaic_0001>

<bundles_post_ra>
// kernel: net_forward.1
= control target key start
LH: loop header
LB: loop body
LE: loop exit
PB: predicated region body
PF: predicated region fallthrough
CT: control target
= control target key end

     0   :  { %vm68_vm0 = vcmask 130048   ;;  %v206_v1 = vmov 0   ;;  %vm158_vm1 = vcmask 1045504   ;;  %s278_s0 = inlined_call_operand.vmem [shape: bf16[16,128], index: 0, kind: input, shape index: {}]   ;;  %s279_s1 = inlined_call_operand.vmem [shape: bf16[30,16], index: 1, kind: input, shape index: {}]   ;;  %s280_s2 = inlined_call_operand.vmem [shape: f32[30,1], index: 2, kind: input, shape index: {}]   ;;  %s281_s3 = inlined_call_operand.vmem [shape: f32[30,1], index: 3, kind: input, shape index: {}]   ;;  %s282_s4 = inlined_call_operand.<no memory space> [shape: f32[1,1], index: 4, kind: input, shape index: {}]   ;;  %s283_s5 = inlined_call_operand.vmem [shape: f32[1,128], index: 5, kind: output, shape index: {}]  }
   0x1   :  { %v199_v0 = vld [vmem:[%s278_s0] sm:$0xff]   ;;  %197 = vset.pattern.permute.xlu0 %v206_v1  ;;  %198 = vset.pattern.permute.xlu1 %v206_v1  ;;  %v201_v3 = vld [vmem:[%s279_s1 + $0x8] sm:$0x7f]   ;;  %v30_v5 = vld [vmem:[%s280_s2 + $0x10] sm:$0xff]  ;;  %v168_v45 = vstv %s282_s4 }
   0x2   :  { %v200_v2 = vld [vmem:[%s279_s1] sm:$0xff]   ;;  %190 = vmatprep.subr.bf16.mxu0 %v199_v0  ;;  %44 = vperm.xlu1 %198, %v30_v5   ;;  %v29_v6 = vld [vmem:[%s280_s2 + $0x8] sm:$0xff]  ;;  %v31_v7 = vld [vmem:[%s280_s2 + $0x18] sm:$0x3f] }
   0x3   :  { %191 = vmatpush3.bf16.msra.mxu0 %v199_v0  ;;  %192 = vmatprep.mubr.msk.bf16.mxu0 %vm68_vm0, %v200_v2  ;;  %v28_v4 = vld [vmem:[%s280_s2] sm:$0xff]  ;;  %v129_v9 = vld [vmem:[%s281_s3 + $0x8] sm:$0xff]  ;;  %v130_v10 = vld [vmem:[%s281_s3 + $0x10] sm:$0xff] }
   0x4   :  { %34 = vperm.xlu0 %197, %v28_v4   ;;  %v128_v8 = vld [vmem:[%s281_s3] sm:$0xff]  ;;  %v131_v11 = vld [vmem:[%s281_s3 + $0x18] sm:$0x3f] }
   0x6   :  { %193 = vmatmul.mubr.msk.bf16.vlgmr.msra.gmra.mrb[0].mxu0 %vm68_vm0, %v201_v3  ;;  %49 = vperm.xlu1 %198, %v31_v7  }
   0x8   :  { %39 = vperm.xlu0 %197, %v29_v6  }
   0xa   :  { %139 = vperm.xlu1 %198, %v129_v9  }
   0xc   :  { %134 = vperm.xlu0 %197, %v128_v8  }
   0xe   :  { %149 = vperm.xlu1 %198, %v131_v11  }
  0x10   :  { %144 = vperm.xlu0 %197, %v130_v10  }
  0x81   :  { %v45_v12 = vpop.permute.xlu1 %44 }
  0x83   :  { %v35_v13 = vpop.permute.xlu0 %34 }
  0x85   :  { %v50_v14 = vpop.permute.xlu1 %49 }
  0x87   :  { %v40_v15 = vpop.permute.xlu0 %39 }
  0x89   :  { %v140_v18 = vpop.permute.xlu1 %139 }
  0x8b   :  { %v135_v22 = vpop.permute.xlu0 %134 }
  0x8d   :  { %v150_v30 = vpop.permute.xlu1 %149 }
  0x8f   :  { %v145_v33 = vpop.permute.xlu0 %144 }
  0xd9   :  { %v194_v16 = vpop.f32.mrb[0].mxu0 }
  0xda   :  { %v109_v17 = vpop.f32.mrb[1].mxu0  ;;  %v118_v19 = vadd.f32 %v194_v16, %v45_v12 }
  0xdb   :  { %v110_v20 = vadd.f32 %v109_v17, %v35_v13  ;;  %v195_v21 = vpop.f32.mrb[2].mxu0 }
  0xdc   :  { %v121_v23 = vadd.f32 %v195_v21, %v50_v14  ;;  %v112_v24 = vpop.f32.mrb[3].mxu0  ;;  %v126_v28 = vmax.f32 %v118_v19, 0.0 }
  0xdd   :  { %v124_v25 = vmax.f32 %v110_v20, 0.0  ;;  %v113_v26 = vadd.f32 %v112_v24, %v40_v15 }
  0xde   :  { %v127_v27 = vmax.f32 %v121_v23, 0.0  ;;  %v154_v35 = vmul.f32 %v145_v33, %v126_v28 }
  0xdf   :  { %v125_v29 = vmax.f32 %v113_v26, 0.0  ;;  %v152_v31 = vmul.f32 %v135_v22, %v124_v25 }
  0xe0   :  { %v155_v34 = vmul.f32 %v150_v30, %v127_v27 }
  0xe1   :  { %v153_v32 = vmul.f32 %v140_v18, %v125_v29 }
  0xe2   :  { %v159_v38 = vsel %vm158_vm1, %v155_v34, 0.0 }
  0xe3   :  { %v156_v36 = vadd.f32 %v153_v32, %v152_v31 }
  0xe5   :  { %v157_v37 = vadd.f32 %v156_v36, %v154_v35 }
  0xe7   :  { %v160_v39 = vadd.f32 %v159_v38, %v157_v37 }
  0xe9   :  { %v161_v40 = vrot.slane %v160_v39, 4 }
  0xeb   :  { %v162_v41 = vadd.f32 %v161_v40, %v160_v39 }
  0xed   :  { %v163_v42 = vrot.slane %v162_v41, 2 }
  0xef   :  { %v164_v43 = vadd.f32 %v163_v42, %v162_v41 }
  0xf1   :  { %v165_v44 = vrot.slane %v164_v43, 1 }
  0xf3   :  { %v166_v46 = vadd.f32 %v165_v44, %v164_v43 }
  0xf5   :  { %v169_v47 = vadd.f32 %v168_v45, %v166_v46 }
  0xf7   :  { %v186_v48 = vmul.f32 -1.442695, %v169_v47 }
  0xf9   :  { %202 = vpow2.f32 %v186_v48 }
 0x103   :  { %v203_v49 = vpop.eup %202 }
 0x104   :  { %v173_v50 = vadd.f32 1.0, %v203_v49 }
 0x106   :  { %204 = vrcp.f32 %v173_v50 }
 0x110   :  { %v205_v51 = vpop.eup %204 }
 0x111   :  { %176 = vst [vmem:[%s283_s5] sm:$0x1] %v205_v51 }

</bundles_post_ra>
